<compile_context>
chip_gen: v7x
topology: tpu7x:2x2x1
jax: 0.10.0
libtpu: 0.0.40
codegen_flags: <defaults>
</compile_context>

<pallas_src>
import functools

import jax
import jax.numpy as jnp
from jax.experimental import pallas as pl
from jax.experimental.pallas import tpu as pltpu

PI = 3.141592653589793


def _round_up(x, m):
    return ((x + m - 1) // m) * m


def _cdiv(a, b):
    return -(-a // b)


# --------------------------------------------------------------------------
# Shared compute body: one (TB, *) batch tile -> (TB, 1) scores.
# --------------------------------------------------------------------------
def _score_tile(head, tail, rel, *, d_pad, inv_scale, gamma, mode):
    head = head.astype(jnp.float32)
    tail = tail.astype(jnp.float32)
    rel = rel.astype(jnp.float32)

    # 128-aligned static slices of the packed [re | im] layout (cheap).
    re_head, im_head = head[:, :d_pad], head[:, d_pad:]
    re_tail, im_tail = tail[:, :d_pad], tail[:, d_pad:]

    phase = rel * inv_scale                 # rel / (emb_range / pi)
    re_rel = jnp.cos(phase)
    im_rel = jnp.sin(phase)

    if mode == 'head-batch':
        re_s = re_rel * re_tail + im_rel * im_tail - re_head
        im_s = re_rel * im_tail - im_rel * re_tail - im_head
    else:                                   # 'tail-batch'
        re_s = re_head * re_rel - im_head * im_rel - re_tail
        im_s = re_head * im_rel + im_head * re_rel - im_tail

    # torch.stack([re, im], 0).norm(dim=0) == sqrt(re^2 + im^2).  Padded
    # columns contribute exactly 0 (cos(0)=1, sin(0)=0, padded operands 0).
    norm = jnp.sqrt(re_s * re_s + im_s * im_s)
    return gamma - jnp.sum(norm, axis=1, keepdims=True)


# --------------------------------------------------------------------------
# Fused-gather kernel: scalar-prefetched triplet indices + manual row DMAs
# from the HBM-resident embedding tables into VMEM scratch.
# --------------------------------------------------------------------------
def _fused_kernel(idx_ref, ent_ref, rel_ref, out_ref, hbuf, tbuf, rbuf, sem, *,
                  tb, d_pad, inv_scale, gamma, mode):
    base = pl.program_id(0) * tb

    @pl.loop(0, tb)
    def _issue(r):
        j = 3 * (base + r)
        h = idx_ref[j]
        rl = idx_ref[j + 1]
        t = idx_ref[j + 2]
        pltpu.make_async_copy(ent_ref.at[pl.ds(h, 1)],
                              hbuf.at[pl.ds(r, 1)], sem.at[0]).start()
        pltpu.make_async_copy(ent_ref.at[pl.ds(t, 1)],
                              tbuf.at[pl.ds(r, 1)], sem.at[1]).start()
        pltpu.make_async_copy(rel_ref.at[pl.ds(rl, 1)],
                              rbuf.at[pl.ds(r, 1)], sem.at[2]).start()

    @pl.loop(0, tb)
    def _wait(r):
        pltpu.make_async_copy(ent_ref.at[pl.ds(0, 1)],
                              hbuf.at[pl.ds(r, 1)], sem.at[0]).wait()
        pltpu.make_async_copy(ent_ref.at[pl.ds(0, 1)],
                              tbuf.at[pl.ds(r, 1)], sem.at[1]).wait()
        pltpu.make_async_copy(rel_ref.at[pl.ds(0, 1)],
                              rbuf.at[pl.ds(r, 1)], sem.at[2]).wait()

    out_ref[...] = _score_tile(hbuf[...], tbuf[...], rbuf[...],
                               d_pad=d_pad, inv_scale=inv_scale,
                               gamma=gamma, mode=mode)


# --------------------------------------------------------------------------
# Blocked (unfused) kernel: pre-gathered, pre-packed (TB, 2*D_pad) blocks.
# --------------------------------------------------------------------------
def _blocked_kernel(head_ref, rel_ref, tail_ref, out_ref, *,
                    d_pad, inv_scale, gamma, mode):
    out_ref[...] = _score_tile(head_ref[...], tail_ref[...], rel_ref[...],
                               d_pad=d_pad, inv_scale=inv_scale,
                               gamma=gamma, mode=mode)


# --------------------------------------------------------------------------
# One-time table packing (done at "init", not per call).
# --------------------------------------------------------------------------
def prepare_rotate_tables(entity_embedding, relation_embedding,
                          dtype=jnp.float32):
    """Pack entity table to (E, 2*D_pad) with re in [0:D), im in
    [D_pad:D_pad+D) (128-aligned split); pad relation table to (R, D_pad)."""
    num_ent, ent_dim = entity_embedding.shape
    d = ent_dim // 2
    d_pad = max(128, _round_up(d, 128))
    ent = jnp.zeros((num_ent, 2 * d_pad), dtype)
    ent = ent.at[:, :d].set(entity_embedding[:, :d].astype(dtype))
    ent = ent.at[:, d_pad:d_pad + d].set(entity_embedding[:, d:].astype(dtype))
    rel = jnp.zeros((relation_embedding.shape[0], d_pad), dtype)
    rel = rel.at[:, :d].set(relation_embedding.astype(dtype))
    return {'entity': ent, 'relation': rel, 'd': d, 'd_pad': d_pad}


# --------------------------------------------------------------------------
# Tile sizing (per-generation VMEM capacity, >=2 tiles, balanced last tile).
# --------------------------------------------------------------------------
def _vmem_capacity_bytes():
    try:
        return int(pltpu.get_tpu_info().vmem_capacity_bytes)
    except Exception:            # conservative default (v7x: 64 MiB / TC)
        return 64 * 1024 * 1024


def _choose_tiles(batch, d_pad, itemsize, max_block_b):
    cap = _vmem_capacity_bytes()
    sublane = max(8, 32 // itemsize)              # 8 f32 / 16 bf16 / 32 int8
    b_sub = _round_up(batch, sublane)

    # Live VMEM per batch row: double-buffered blocked inputs (2 * 5*d_pad
    # words) or single-buffered gather scratch (5*d_pad) + ~2 f32 temps.
    row_bytes = 10 * d_pad * itemsize + 2 * d_pad * 4
    budget = int(0.40 * cap)
    tb = max(sublane, (budget // row_bytes) // sublane * sublane)
    tb = min(tb, max_block_b)
    if b_sub >= 2 * sublane:      # guarantee >=2 tiles so both v7x TCs work
        tb = min(tb, _round_up(_cdiv(b_sub, 2), sublane))
    tb = max(sublane, (tb // sublane) * sublane)

    num_tiles = _cdiv(b_sub, tb)  # rebalance: last-tile waste < one sublane group
    tb = _round_up(_cdiv(b_sub, num_tiles), sublane)
    b_pad = num_tiles * tb

    vmem_limit = max(32 * 1024 * 1024, min(int(0.55 * cap), 100 * 1024 * 1024))
    return tb, num_tiles, b_pad, vmem_limit


# --------------------------------------------------------------------------
# Score wrapper: pallas_call plumbing.
# --------------------------------------------------------------------------
def rotate_score(triplet_idx, tables, *, emb_range, gamma, mode='head-batch',
                 fuse_gather=True, max_block_b=1024):
    assert mode in ('head-batch', 'tail-batch')
    ent, rel = tables['entity'], tables['relation']
    d_pad = tables['d_pad']
    itemsize = jnp.dtype(ent.dtype).itemsize
    batch = triplet_idx.shape[0]

    tb, num_tiles, b_pad, vmem_limit = _choose_tiles(
        batch, d_pad, itemsize, max_block_b)

    # Pad the (tiny) index list only; padded rows point at row 0 and are
    # sliced off at the end.
    idx = jnp.pad(triplet_idx.astype(jnp.int32), ((0, b_pad - batch), (0, 0)))

    inv_scale = float(PI / emb_range)
    cost = pl.CostEstimate(
        flops=int(10 * b_pad * d_pad),
        transcendentals=int(3 * b_pad * d_pad),
        bytes_accessed=int(5 * b_pad * d_pad * itemsize + b_pad * 4))
    cparams = pltpu.CompilerParams(
        dimension_semantics=("parallel",),
        vmem_limit_bytes=vmem_limit)
    out_shape = jax.ShapeDtypeStruct((b_pad, 1), jnp.float32)

    if fuse_gather:
        kernel = functools.partial(
            _fused_kernel, tb=tb, d_pad=d_pad, inv_scale=inv_scale,
            gamma=float(gamma), mode=mode)
        grid_spec = pltpu.PrefetchScalarGridSpec(
            num_scalar_prefetch=1,
            grid=(num_tiles,),
            in_specs=[pl.BlockSpec(memory_space=pl.ANY),    # entity table (HBM)
                      pl.BlockSpec(memory_space=pl.ANY)],   # relation table (HBM)
            out_specs=pl.BlockSpec((tb, 1), lambda i, idx_ref: (i, 0)),
            scratch_shapes=[pltpu.VMEM((tb, 2 * d_pad), ent.dtype),
                            pltpu.VMEM((tb, 2 * d_pad), ent.dtype),
                            pltpu.VMEM((tb, d_pad), rel.dtype),
                            pltpu.SemaphoreType.DMA((3,))])
        out = pl.pallas_call(
            kernel, out_shape=out_shape, grid_spec=grid_spec,
            compiler_params=cparams, cost_estimate=cost,
        )(idx.reshape(-1), ent, rel)
    else:
        # Fallback path: XLA gather on the pre-packed tables (no per-call pad
        # or column-slice), then lane-aligned pipelined blocks.
        head_e = jnp.take(ent, idx[:, 0], axis=0)
        rel_e = jnp.take(rel, idx[:, 1], axis=0)
        tail_e = jnp.take(ent, idx[:, 2], axis=0)
        kernel = functools.partial(
            _blocked_kernel, d_pad=d_pad, inv_scale=inv_scale,
            gamma=float(gamma), mode=mode)
        ent_spec = pl.BlockSpec((tb, 2 * d_pad), lambda i: (i, 0))
        rel_spec = pl.BlockSpec((tb, d_pad), lambda i: (i, 0))
        out = pl.pallas_call(
            kernel, out_shape=out_shape, grid=(num_tiles,),
            in_specs=[ent_spec, rel_spec, ent_spec],
            out_specs=pl.BlockSpec((tb, 1), lambda i: (i, 0)),
            compiler_params=cparams, cost_estimate=cost,
        )(head_e, rel_e, tail_e)

    return out[:batch, 0]


def rotate_forward(triplet_idx, entity_embedding, relation_embedding, *,
                   emb_range, gamma, mode='head-batch', fuse_gather=True,
                   table_dtype=jnp.float32):
    # NOTE: in a real model prepare_rotate_tables() is called once at init;
    # it is inlined here only to keep this helper self-contained.
    tables = prepare_rotate_tables(entity_embedding, relation_embedding,
                                   dtype=table_dtype)
    return rotate_score(triplet_idx, tables, emb_range=emb_range, gamma=gamma,
                        mode=mode, fuse_gather=fuse_gather)


# --------------------------------------------------------------------------
# Pure-JAX reference mirroring the PyTorch get_score()
# --------------------------------------------------------------------------
def rotate_reference(triplet_idx, entity_embedding, relation_embedding, *,
                     emb_range, gamma, mode='head-batch'):
    head = jnp.take(entity_embedding, triplet_idx[:, 0], axis=0)
    rel = jnp.take(relation_embedding, triplet_idx[:, 1], axis=0)
    tail = jnp.take(entity_embedding, triplet_idx[:, 2], axis=0)
    d = rel.shape[1]
    re_head, im_head = head[:, :d], head[:, d:]
    re_tail, im_tail = tail[:, :d], tail[:, d:]
    phase = rel / (emb_range / PI)
    re_r, im_r = jnp.cos(phase), jnp.sin(phase)
    if mode == 'head-batch':
        re_s = re_r * re_tail + im_r * im_tail - re_head
        im_s = re_r * im_tail - im_r * re_tail - im_head
    else:
        re_s = re_head * re_r - im_head * im_r - re_tail
        im_s = re_head * im_r + im_head * re_r - im_tail
    score = jnp.sqrt(re_s ** 2 + im_s ** 2)
    return gamma - jnp.sum(score, axis=1)


# --------------------------------------------------------------------------
# Demo / self-test
# --------------------------------------------------------------------------
if __name__ == "__main__":
    entity_dict_len = 16
    relation_dict_len = 8
    embedding_dim = 32                  # relation_dim = 32, entity_dim = 64
    gamma = 6.0
    epsilon = 2.0
    embedding_range = (gamma + epsilon) / embedding_dim

    entity_dim = embedding_dim * 2
    relation_dim = embedding_dim
    batch = 12                          # deliberately not a multiple of 8

    key = jax.random.PRNGKey(0)
    k_ent, k_rel, k_h, k_r, k_t = jax.random.split(key, 5)

    entity_embedding = jax.random.uniform(
        k_ent, (entity_dict_len, entity_dim),
        minval=-embedding_range, maxval=embedding_range, dtype=jnp.float32)
    relation_embedding = jax.random.uniform(
        k_rel, (relation_dict_len, relation_dim),
        minval=-embedding_range, maxval=embedding_range, dtype=jnp.float32)

    triplet_idx = jnp.stack([
        jax.random.randint(k_h, (batch,), 0, entity_dict_len),
        jax.random.randint(k_r, (batch,), 0, relation_dict_len),
        jax.random.randint(k_t, (batch,), 0, entity_dict_len),
    ], axis=1).astype(jnp.int32)        # (B, 3)

    tables = prepare_rotate_tables(entity_embedding, relation_embedding)

    ok = True
    for mode in ('head-batch', 'tail-batch'):
        ref = rotate_reference(
            triplet_idx, entity_embedding, relation_embedding,
            emb_range=embedding_range, gamma=gamma, mode=mode)
        for fuse in (True, False):
            score = rotate_score(
                triplet_idx, tables, emb_range=embedding_range, gamma=gamma,
                mode=mode, fuse_gather=fuse)
            score = jax.block_until_ready(score)
            assert score.shape == (batch,)
            good = bool(jnp.allclose(score, ref, atol=1e-4, rtol=1e-5))
            assert good, (
                f"mode={mode} fuse={fuse}: "
                f"max abs err {jnp.max(jnp.abs(score - ref))}")
            ok = ok and good

    if ok:
        print("KERNEL_OK")
</pallas_src>

<mosaic_0001>
module attributes {stable_mosaic.version = 11 : i64} {
  func.func @_fused_kernel(%arg0: i32, %arg1: memref<48xi32, #tpu.memory_space<smem>>, %arg2: memref<16x256xf32, #tpu.memory_space<any>>, %arg3: memref<8x128xf32, #tpu.memory_space<any>>, %arg4: memref<8x1xf32, #tpu.memory_space<vmem>>, %arg5: memref<8x256xf32, #tpu.memory_space<vmem>>, %arg6: memref<8x256xf32, #tpu.memory_space<vmem>>, %arg7: memref<8x128xf32, #tpu.memory_space<vmem>>, %arg8: memref<3x!tpu.dma_semaphore, #tpu.memory_space<semaphore_mem>>) attributes {dimension_semantics = [#tpu.dimension_semantics<parallel>], iteration_bounds = array<i64: 2>, scalar_prefetch = 1 : i64, scratch_operands = 4 : i64, tpu.core_type = #tpu.core_type<tc>, window_params = [{}, {}, {transform_indices = @transform_2, window_bounds = array<i64: 8, 1>}]} {
    %c8_i32 = arith.constant 8 : i32
    %0 = arith.muli %arg0, %c8_i32 : i32
    %c0_i32 = arith.constant 0 : i32
    %c8_i32_0 = arith.constant 8 : i32
    %1 = arith.addi %c0_i32, %c8_i32_0 : i32
    %c1_i32 = arith.constant 1 : i32
    scf.for %arg9 = %c0_i32 to %1 step %c1_i32  : i32 {
      %c1_i32_15 = arith.constant 1 : i32
      %31 = arith.muli %arg9, %c1_i32_15 : i32
      %c0_i32_16 = arith.constant 0 : i32
      %32 = arith.addi %c0_i32_16, %31 : i32
      %33 = arith.addi %0, %32 : i32
      %c3_i32 = arith.constant 3 : i32
      %34 = arith.muli %c3_i32, %33 : i32
      %35 = arith.index_cast %34 : i32 to index
      %36 = memref.load %arg1[%35] : memref<48xi32, #tpu.memory_space<smem>>
      %c1_i32_17 = arith.constant 1 : i32
      %37 = arith.addi %34, %c1_i32_17 : i32
      %38 = arith.index_cast %37 : i32 to index
      %39 = memref.load %arg1[%38] : memref<48xi32, #tpu.memory_space<smem>>
      %c2_i32 = arith.constant 2 : i32
      %40 = arith.addi %34, %c2_i32 : i32
      %41 = arith.index_cast %40 : i32 to index
      %42 = memref.load %arg1[%41] : memref<48xi32, #tpu.memory_space<smem>>
      %c0_i32_18 = arith.constant 0 : i32
      %c0_i32_19 = arith.constant 0 : i32
      %43 = tpu.memref_slice %arg2[%36, %c0_i32_19] : memref<16x256xf32, #tpu.memory_space<any>> -> memref<1x256xf32, #tpu.memory_space<any>>
      %c0_i32_20 = arith.constant 0 : i32
      %44 = tpu.memref_slice %arg5[%32, %c0_i32_20] : memref<8x256xf32, #tpu.memory_space<vmem>> -> memref<1x256xf32, #tpu.memory_space<vmem>>
      %45 = tpu.memref_slice %arg8[%c0_i32_18] : memref<3x!tpu.dma_semaphore, #tpu.memory_space<semaphore_mem>> -> memref<1x!tpu.dma_semaphore, #tpu.memory_space<semaphore_mem>>
      %46 = tpu.memref_squeeze %45 : memref<1x!tpu.dma_semaphore, #tpu.memory_space<semaphore_mem>> -> memref<!tpu.dma_semaphore, #tpu.memory_space<semaphore_mem>>
      tpu.enqueue_dma source(%43 : memref<1x256xf32, #tpu.memory_space<any>>) target(%44 : memref<1x256xf32, #tpu.memory_space<vmem>>) target_semaphore(%46 : memref<!tpu.dma_semaphore, #tpu.memory_space<semaphore_mem>>)
      %c1_i32_21 = arith.constant 1 : i32
      %c0_i32_22 = arith.constant 0 : i32
      %47 = tpu.memref_slice %arg2[%42, %c0_i32_22] : memref<16x256xf32, #tpu.memory_space<any>> -> memref<1x256xf32, #tpu.memory_space<any>>
      %c0_i32_23 = arith.constant 0 : i32
      %48 = tpu.memref_slice %arg6[%32, %c0_i32_23] : memref<8x256xf32, #tpu.memory_space<vmem>> -> memref<1x256xf32, #tpu.memory_space<vmem>>
      %49 = tpu.memref_slice %arg8[%c1_i32_21] : memref<3x!tpu.dma_semaphore, #tpu.memory_space<semaphore_mem>> -> memref<1x!tpu.dma_semaphore, #tpu.memory_space<semaphore_mem>>
      %50 = tpu.memref_squeeze %49 : memref<1x!tpu.dma_semaphore, #tpu.memory_space<semaphore_mem>> -> memref<!tpu.dma_semaphore, #tpu.memory_space<semaphore_mem>>
      tpu.enqueue_dma source(%47 : memref<1x256xf32, #tpu.memory_space<any>>) target(%48 : memref<1x256xf32, #tpu.memory_space<vmem>>) target_semaphore(%50 : memref<!tpu.dma_semaphore, #tpu.memory_space<semaphore_mem>>)
      %c2_i32_24 = arith.constant 2 : i32
      %c0_i32_25 = arith.constant 0 : i32
      %51 = tpu.memref_slice %arg3[%39, %c0_i32_25] : memref<8x128xf32, #tpu.memory_space<any>> -> memref<1x128xf32, #tpu.memory_space<any>>
      %c0_i32_26 = arith.constant 0 : i32
      %52 = tpu.memref_slice %arg7[%32, %c0_i32_26] : memref<8x128xf32, #tpu.memory_space<vmem>> -> memref<1x128xf32, #tpu.memory_space<vmem>>
      %53 = tpu.memref_slice %arg8[%c2_i32_24] : memref<3x!tpu.dma_semaphore, #tpu.memory_space<semaphore_mem>> -> memref<1x!tpu.dma_semaphore, #tpu.memory_space<semaphore_mem>>
      %54 = tpu.memref_squeeze %53 : memref<1x!tpu.dma_semaphore, #tpu.memory_space<semaphore_mem>> -> memref<!tpu.dma_semaphore, #tpu.memory_space<semaphore_mem>>
      tpu.enqueue_dma source(%51 : memref<1x128xf32, #tpu.memory_space<any>>) target(%52 : memref<1x128xf32, #tpu.memory_space<vmem>>) target_semaphore(%54 : memref<!tpu.dma_semaphore, #tpu.memory_space<semaphore_mem>>)
    }
    %c8_i32_1 = arith.constant 8 : i32
    %c0_i32_2 = arith.constant 0 : i32
    %c8_i32_3 = arith.constant 8 : i32
    %2 = arith.addi %c0_i32_2, %c8_i32_3 : i32
    %c1_i32_4 = arith.constant 1 : i32
    scf.for %arg9 = %c0_i32_2 to %2 step %c1_i32_4  : i32 {
      %c1_i32_15 = arith.constant 1 : i32
      %31 = arith.muli %arg9, %c1_i32_15 : i32
      %c0_i32_16 = arith.constant 0 : i32
      %32 = arith.addi %c0_i32_16, %31 : i32
      %c0_i32_17 = arith.constant 0 : i32
      %c0_i32_18 = arith.constant 0 : i32
      %c0_i32_19 = arith.constant 0 : i32
      %33 = tpu.memref_slice %arg2[%c0_i32_18, %c0_i32_19] : memref<16x256xf32, #tpu.memory_space<any>> -> memref<1x256xf32, #tpu.memory_space<any>>
      %c0_i32_20 = arith.constant 0 : i32
      %34 = tpu.memref_slice %arg5[%32, %c0_i32_20] : memref<8x256xf32, #tpu.memory_space<vmem>> -> memref<1x256xf32, #tpu.memory_space<vmem>>
      %35 = tpu.memref_slice %arg8[%c0_i32_17] : memref<3x!tpu.dma_semaphore, #tpu.memory_space<semaphore_mem>> -> memref<1x!tpu.dma_semaphore, #tpu.memory_space<semaphore_mem>>
      %36 = tpu.memref_squeeze %35 : memref<1x!tpu.dma_semaphore, #tpu.memory_space<semaphore_mem>> -> memref<!tpu.dma_semaphore, #tpu.memory_space<semaphore_mem>>
      tpu.wait_dma2 semaphore(%36 : memref<!tpu.dma_semaphore, #tpu.memory_space<semaphore_mem>>) src(%33 : memref<1x256xf32, #tpu.memory_space<any>>) dst(%34 : memref<1x256xf32, #tpu.memory_space<vmem>>)
      %c1_i32_21 = arith.constant 1 : i32
      %c0_i32_22 = arith.constant 0 : i32
      %c0_i32_23 = arith.constant 0 : i32
      %37 = tpu.memref_slice %arg2[%c0_i32_22, %c0_i32_23] : memref<16x256xf32, #tpu.memory_space<any>> -> memref<1x256xf32, #tpu.memory_space<any>>
      %c0_i32_24 = arith.constant 0 : i32
      %38 = tpu.memref_slice %arg6[%32, %c0_i32_24] : memref<8x256xf32, #tpu.memory_space<vmem>> -> memref<1x256xf32, #tpu.memory_space<vmem>>
      %39 = tpu.memref_slice %arg8[%c1_i32_21] : memref<3x!tpu.dma_semaphore, #tpu.memory_space<semaphore_mem>> -> memref<1x!tpu.dma_semaphore, #tpu.memory_space<semaphore_mem>>
      %40 = tpu.memref_squeeze %39 : memref<1x!tpu.dma_semaphore, #tpu.memory_space<semaphore_mem>> -> memref<!tpu.dma_semaphore, #tpu.memory_space<semaphore_mem>>
      tpu.wait_dma2 semaphore(%40 : memref<!tpu.dma_semaphore, #tpu.memory_space<semaphore_mem>>) src(%37 : memref<1x256xf32, #tpu.memory_space<any>>) dst(%38 : memref<1x256xf32, #tpu.memory_space<vmem>>)
      %c2_i32 = arith.constant 2 : i32
      %c0_i32_25 = arith.constant 0 : i32
      %c0_i32_26 = arith.constant 0 : i32
      %41 = tpu.memref_slice %arg3[%c0_i32_25, %c0_i32_26] : memref<8x128xf32, #tpu.memory_space<any>> -> memref<1x128xf32, #tpu.memory_space<any>>
      %c0_i32_27 = arith.constant 0 : i32
      %42 = tpu.memref_slice %arg7[%32, %c0_i32_27] : memref<8x128xf32, #tpu.memory_space<vmem>> -> memref<1x128xf32, #tpu.memory_space<vmem>>
      %43 = tpu.memref_slice %arg8[%c2_i32] : memref<3x!tpu.dma_semaphore, #tpu.memory_space<semaphore_mem>> -> memref<1x!tpu.dma_semaphore, #tpu.memory_space<semaphore_mem>>
      %44 = tpu.memref_squeeze %43 : memref<1x!tpu.dma_semaphore, #tpu.memory_space<semaphore_mem>> -> memref<!tpu.dma_semaphore, #tpu.memory_space<semaphore_mem>>
      tpu.wait_dma2 semaphore(%44 : memref<!tpu.dma_semaphore, #tpu.memory_space<semaphore_mem>>) src(%41 : memref<1x128xf32, #tpu.memory_space<any>>) dst(%42 : memref<1x128xf32, #tpu.memory_space<vmem>>)
    }
    %c8_i32_5 = arith.constant 8 : i32
    %c0 = arith.constant 0 : index
    %c0_6 = arith.constant 0 : index
    %3 = vector.load %arg5[%c0, %c0_6] : memref<8x256xf32, #tpu.memory_space<vmem>>, vector<8x256xf32>
    %c0_7 = arith.constant 0 : index
    %c0_8 = arith.constant 0 : index
    %4 = vector.load %arg6[%c0_7, %c0_8] : memref<8x256xf32, #tpu.memory_space<vmem>>, vector<8x256xf32>
    %c0_9 = arith.constant 0 : index
    %c0_10 = arith.constant 0 : index
    %5 = vector.load %arg7[%c0_9, %c0_10] : memref<8x128xf32, #tpu.memory_space<vmem>>, vector<8x128xf32>
    %6 = vector.extract_strided_slice %3 {offsets = [0, 0], sizes = [8, 128], strides = [1, 1]} : vector<8x256xf32> to vector<8x128xf32>
    %7 = vector.extract_strided_slice %3 {offsets = [0, 128], sizes = [8, 128], strides = [1, 1]} : vector<8x256xf32> to vector<8x128xf32>
    %8 = vector.extract_strided_slice %4 {offsets = [0, 0], sizes = [8, 128], strides = [1, 1]} : vector<8x256xf32> to vector<8x128xf32>
    %9 = vector.extract_strided_slice %4 {offsets = [0, 128], sizes = [8, 128], strides = [1, 1]} : vector<8x256xf32> to vector<8x128xf32>
    %cst = arith.constant 12.566371 : f32
    %10 = vector.broadcast %cst : f32 to vector<8x128xf32>
    %11 = arith.mulf %5, %10 : vector<8x128xf32>
    %12 = math.cos %11 : vector<8x128xf32>
    %13 = math.sin %11 : vector<8x128xf32>
    %14 = arith.mulf %12, %8 : vector<8x128xf32>
    %15 = arith.mulf %13, %9 : vector<8x128xf32>
    %16 = arith.addf %14, %15 : vector<8x128xf32>
    %17 = arith.subf %16, %6 : vector<8x128xf32>
    %18 = arith.mulf %12, %9 : vector<8x128xf32>
    %19 = arith.mulf %13, %8 : vector<8x128xf32>
    %20 = arith.subf %18, %19 : vector<8x128xf32>
    %21 = arith.subf %20, %7 : vector<8x128xf32>
    %22 = arith.mulf %17, %17 : vector<8x128xf32>
    %23 = arith.mulf %21, %21 : vector<8x128xf32>
    %24 = arith.addf %22, %23 : vector<8x128xf32>
    %25 = math.sqrt %24 : vector<8x128xf32>
    %cst_11 = arith.constant dense<0.000000e+00> : vector<8xf32>
    %26 = vector.multi_reduction <add>, %25, %cst_11 [1] : vector<8x128xf32> to vector<8xf32>
    %27 = vector.shape_cast %26 : vector<8xf32> to vector<8x1xf32>
    %cst_12 = arith.constant 6.000000e+00 : f32
    %28 = vector.broadcast %cst_12 : f32 to vector<8x1xf32>
    %29 = arith.subf %28, %27 : vector<8x1xf32>
    %c0_13 = arith.constant 0 : index
    %c0_14 = arith.constant 0 : index
    %30 = vector.load %arg4[%c0_13, %c0_14] : memref<8x1xf32, #tpu.memory_space<vmem>>, vector<8x1xf32>
    tpu.vector_store %arg4[%c0_13, %c0_14], %29 {strides = array<i32>} : memref<8x1xf32, #tpu.memory_space<vmem>>, vector<8x1xf32>,
    return
  }
  func.func @transform_2(%arg0: i32, %arg1: memref<48xi32, #tpu.memory_space<smem>>) -> (i32, i32) {
    %c0_i32 = arith.constant 0 : i32
    %c0_i32_0 = arith.constant 0 : i32
    return %arg0, %c0_i32 : i32, i32
  }
}

</mosaic_0001>

<bundles_post_ra>
// kernel: tpu_custom_call.1
= control target key start
LH: loop header
LB: loop body
LE: loop exit
PB: predicated region body
PF: predicated region fallthrough
CT: control target
= control target key end

     0   :  { %s800_s0 = inlined_call_operand.hbm [shape: s32[48], index: 0, kind: input, shape index: {}]   ;;  %s801_s1 = inlined_call_operand.hbm [shape: f32[16,256], index: 1, kind: input, shape index: {}]   ;;  %s802_s2 = inlined_call_operand.hbm [shape: f32[8,128], index: 2, kind: input, shape index: {}]   ;;  %s803_s3 = inlined_call_operand.vmem [shape: f32[16,1], index: 3, kind: output, shape index: {}]  }
   0x1   :  { %s514_s14 = scalar_lea.hbm %s800_s0, 16 }
   0x2   :  { %p515_p0 = scmp.ne.s32.totalorder %s800_s0, %s514_s14  ;;  %p518_p1 = scmp.lt.u32.totalorder %s514_s14, %s800_s0 }
   0x4   :  { %p520_p2 = pnand %p518_p1, %p515_p0 }
   0x6   :  { %523 = shalt.err (!%p520_p2)  }
   0x7   :  { %s628_s19 = smov [#allocation7]  }
   0x8   :  { %9 = dma.hbm_to_smem %s800_s0, 16, %s628_s19, [#allocation6] }
   0x9   :  { %608 = dma.done.wait [#allocation6], 16 }
   0xa   :  { %609 = vsyncadd [#allocation6], 4294967280 }
   0xb   :  { %11 = sfence }
   0xc   :  { %s672_s22 = smov 0  }
   0xd LB: > { %p449_p3 = scmp.ge.s32.totalorder %s618_s22, 2  ;;  %s618_s22 = sphi %s672_s22, %s17_s22  }
   0xe   : > { %p49_p4 = scmp.lt.s32.totalorder (!%p449_p3), %s618_s22, 1  ;;  %s451_s23 = sshll.u32 (!%p449_p3), %s618_s22, 3 }
   0xf   : > { %42 = sbr.rel (%p449_p3) target bundleno = 379 (0x17b), region = 12  ;;  %s686_s28 = smov (!%p449_p3), 0  }
  0x16   : > { %s50_s24 = scalar_select %p49_p4, %s618_s22, 1 }
  0x18   : > { %s450_s0 = sshll.u32 %s50_s24, 3 }
  0x19   : > { %s684_s27 = scalar_lea.vmem %s803_s3, %s450_s0 }
  0x1a LB: >> { %s60_s29 = sadd.s32 %s622_s28, %s451_s23  ;;  %s73_s30 = sshrl.u32 %s622_s28, 3  ;;  %s622_s28 = sphi %s686_s28, %s59_s28  }
  0x1b   : >> { %s61_s4 = smul.u32 3, %s60_s29  ;;  %s74_s5 = sand.u32 7, %s622_s28  }
  0x1c   : >> { %s454_s6 = sshll.u32 %s73_s30, 4  ;;  %s98_s21 = scalar_lea.vmem [#allocation4], %s622_s28 }
  0x1d   : >> { %s62_s7 = sld [smem:[#allocation7 + %s61_s4]]  ;;  %s76_s8 = sadd.s32 %s454_s6, %s74_s5 }
  0x1e   : >> { %s77_s9 = scalar_lea.vmem [#allocation2], %s76_s8  ;;  %s65_s11 = sadd.s32 2, %s61_s4 }
  0x1f   : >> { %s79_s10 = sshll.u32 %s77_s9, 4  ;;  %s696_s12 = sld [smem:[#allocation7 + %s65_s11]]  ;;  %s698_s10 = int_to_ptr.vmem [resolvable:$true] %s79_s10 }
  0x20   : >> { %s89_s13 = scalar_lea.vmem [#allocation3], %s76_s8  ;;  %s63_s15 = sadd.s32 1, %s61_s4 }
  0x21   : >> { %s92_s14 = sshll.u32 %s89_s13, 4  ;;  %s700_s16 = sld [smem:[#allocation7 + %s63_s15]]  ;;  %s702_s14 = int_to_ptr.vmem [resolvable:$true] %s92_s14 }
  0x22   : >> { %s705_s24 = sshll.u32 %s98_s21, 4  ;;  %s733_s24 = int_to_ptr.vmem [resolvable:$true] %s705_s24 }
  0x23   : >> { %s67_s17 = sshrl.u32 %s62_s7, 3  ;;  %s68_s18 = sand.u32 7, %s62_s7  }
  0x24   : >> { %s452_s19 = sshll.u32 %s67_s17, 4  ;;  %s526_s7 = scalar_lea.hbm %s801_s1, 512 }
  0x25   : >> { %s70_s20 = sadd.s32 %s452_s19, %s68_s18  ;;  %s83_s25 = sshrl.u32 %s696_s12, 3 }
  0x26   : >> { %s453_s0 = sshll.u32 %s70_s20, 4  ;;  %s84_s4 = sand.u32 7, %s696_s12  }
  0x27   : >> { %s72_s30 = scalar_lea.hbm %s801_s1, %s453_s0 }
  0x28   : >> { %s524_s5 = scalar_lea.hbm %s72_s30, 32  ;;  %p527_p6 = scmp.lt.u32.totalorder %s72_s30, %s801_s1 }
  0x29   : >> { %p525_p5 = scmp.ne.s32.totalorder %s72_s30, %s524_s5  ;;  %p528_p7 = scmp.lt.u32.totalorder %s526_s7, %s524_s5 }
  0x2a   : >> { %p530_p9 = scmp.lt.u32.totalorder %s524_s5, %s72_s30 }
  0x2b   : >> { %p529_p8 = por %p528_p7, %p527_p6 }
  0x2d   : >> { %p531_p10 = por %p530_p9, %p529_p8 }
  0x2f   : >> { %p532_p11 = pnand %p531_p10, %p525_p5 }
  0x31   : >> { %535 = shalt.err (!%p532_p11)  }
  0x32   : >> { %s536_s17 = scalar_lea.vmem %s698_s10, 32  ;;  %s629_s18 = smov [#allocation2]  }
  0x33   : >> { %p537_p12 = scmp.ne.s32.totalorder %s698_s10, %s536_s17  ;;  %s538_s19 = sshll.u32 %s629_s18, 4  ;;  %s539_s19 = int_to_ptr.vmem [resolvable:$false] %s538_s19 }
  0x34   : >> { %s540_s20 = scalar_lea.vmem %s539_s19, 256  ;;  %p541_p13 = scmp.lt.s32.totalorder %s698_s10, %s539_s19 }
  0x35   : >> { %p542_p0 = scmp.lt.s32.totalorder %s540_s20, %s536_s17 }
  0x37   : >> { %p543_p1 = por %p542_p0, %p541_p13 }
  0x39   : >> { %p544_p2 = pnand %p543_p1, %p537_p12 }
  0x3b   : >> { %547 = shalt.err (!%p544_p2)  }
  0x3c   : >> { %s630_s21 = smov 128   ;;  %s631_s0 = smov 1  }
  0x3d   : >> { %82 = dma.hbm_to_vmem [thread:$0]  %s72_s30, 32, %s698_s10, [#allocation5], %s630_s21, %s630_s21, %s631_s0 }
  0x3e   : >> { %s455_s26 = sshll.u32 %s83_s25, 4  ;;  %s457_s29 = sshll.u32 %s700_s16, 4 }
  0x3f   : >> { %s86_s5 = sadd.s32 %s455_s26, %s84_s4  ;;  %s738_s11 = scalar_lea.hbm %s802_s2, %s457_s29 }
  0x40   : >> { %s456_s6 = sshll.u32 %s86_s5, 4 }
  0x41   : >> { %s88_s17 = scalar_lea.hbm %s801_s1, %s456_s6 }
  0x42   : >> { %s548_s18 = scalar_lea.hbm %s88_s17, 32  ;;  %p551_p4 = scmp.lt.u32.totalorder %s88_s17, %s801_s1 }
  0x43   : >> { %p549_p3 = scmp.ne.s32.totalorder %s88_s17, %s548_s18  ;;  %p552_p5 = scmp.lt.u32.totalorder %s526_s7, %s548_s18 }
  0x44   : >> { %p554_p7 = scmp.lt.u32.totalorder %s548_s18, %s88_s17 }
  0x45   : >> { %p553_p6 = por %p552_p5, %p551_p4 }
  0x47   : >> { %p555_p8 = por %p554_p7, %p553_p6 }
  0x49   : >> { %p556_p9 = pnand %p555_p8, %p549_p3 }
  0x4b   : >> { %559 = shalt.err (!%p556_p9)  }
  0x4c   : >> { %s560_s25 = scalar_lea.vmem %s702_s14, 32  ;;  %s632_s30 = smov [#allocation3]  }
  0x4d   : >> { %p561_p10 = scmp.ne.s32.totalorder %s702_s14, %s560_s25  ;;  %s562_s4 = sshll.u32 %s632_s30, 4  ;;  %s563_s4 = int_to_ptr.vmem [resolvable:$false] %s562_s4 }
  0x4e   : >> { %s564_s20 = scalar_lea.vmem %s563_s4, 256  ;;  %p565_p11 = scmp.lt.s32.totalorder %s702_s14, %s563_s4 }
  0x4f   : >> { %p566_p12 = scmp.lt.s32.totalorder %s564_s20, %s560_s25 }
  0x51   : >> { %p567_p13 = por %p566_p12, %p565_p11 }
  0x53   : >> { %p568_p0 = pnand %p567_p13, %p561_p10 }
  0x55   : >> { %571 = shalt.err (!%p568_p0)  }
  0x56   : >> { %95 = dma.hbm_to_vmem [thread:$0]  %s88_s17, 32, %s702_s14, [#allocation5 + $0x1], %s630_s21, %s630_s21, %s631_s0 }
  0x57   : >> { %s572_s7 = scalar_lea.hbm %s738_s11, 16  ;;  %s574_s5 = scalar_lea.hbm %s802_s2, 128 }
  0x58   : >> { %p573_p1 = scmp.ne.s32.totalorder %s738_s11, %s572_s7  ;;  %p575_p2 = scmp.lt.u32.totalorder %s738_s11, %s802_s2 }
  0x59   : >> { %p576_p3 = scmp.lt.u32.totalorder %s574_s5, %s572_s7  ;;  %p578_p5 = scmp.lt.u32.totalorder %s572_s7, %s738_s11 }
  0x5b   : >> { %p577_p4 = por %p576_p3, %p575_p2 }
  0x5d   : >> { %p579_p6 = por %p578_p5, %p577_p4 }
  0x5f   : >> { %p580_p7 = pnand %p579_p6, %p573_p1 }
  0x61   : >> { %583 = shalt.err (!%p580_p7)  }
  0x62   : >> { %s584_s14 = scalar_lea.vmem %s733_s24, 16  ;;  %s633_s21 = smov [#allocation4]  }
  0x63   : >> { %p585_p8 = scmp.ne.s32.totalorder %s733_s24, %s584_s14  ;;  %s586_s0 = sshll.u32 %s633_s21, 4  ;;  %s587_s0 = int_to_ptr.vmem [resolvable:$false] %s586_s0 }
  0x64   : >> { %s588_s9 = scalar_lea.vmem %s587_s0, 128  ;;  %p589_p9 = scmp.lt.s32.totalorder %s733_s24, %s587_s0 }
  0x65   : >> { %p590_p10 = scmp.lt.s32.totalorder %s588_s9, %s584_s14 }
  0x67   : >> { %p591_p11 = por %p590_p10, %p589_p9 }
  0x69   : >> { %p592_p12 = pnand %p591_p11, %p585_p8 }
  0x6b   : >> { %595 = shalt.err (!%p592_p12)  }
  0x6c   : >> { %110 = dma.hbm_to_vmem [thread:$0]  %s738_s11, 16, %s733_s24, [#allocation5 + $0x2] }
  0x6d   : >> { %s59_s28 = sadd.s32 1, %s622_s28  }
  0x6e   : >> { %p56_p13 = scmp.ge.s32.totalorder %s59_s28, 8  }
  0x6f   : > { %s624_s13 = smov (%p56_p13), 0  }
  0x70   : > { %58 = sbr.rel (!%p56_p13) target bundleno = 26 (0x1a), region = 69 }
  0x77 LB: >> { %610 = dma.done.wait [#allocation5], 32  ;;  %s626_s13 = sphi %s624_s13, %s116_s13  }
  0x78   : >> { %611 = vsyncadd [#allocation5], 4294967264 }
  0x79   : >> { %612 = dma.done.wait [#allocation5 + $0x1], 32 }
  0x7a   : >> { %613 = vsyncadd [#allocation5 + $0x1], 4294967264 }
  0x7b   : >> { %614 = dma.done.wait [#allocation5 + $0x2], 16 }
  0x7c   : >> { %615 = vsyncadd [#allocation5 + $0x2], 4294967280  ;;  %s116_s13 = sadd.s32 1, %s626_s13  }
  0x7d   : >> { %p113_p0 = scmp.ge.s32.totalorder %s116_s13, 8  }
  0x7e   : > { %v131_v0 = vld [vmem:[#allocation4] sm:$0xff] (%p113_p0)  ;;  %v634_v13 = vmov (%p113_p0), 683565275   ;;  %v635_v15 = vmov (%p113_p0), 2475754826  }
  0x7f   : > { %115 = sbr.rel (!%p113_p0) target bundleno = 119 (0x77), region = 80  ;;  %v775_v1 = vmul.f32 (%p113_p0), 12.566371, %v131_v0  ;;  %v636_v17 = vmov (%p113_p0), 2131351028  }
  0x80   : > { %v637_v19 = vmov (%p113_p0), 2102212464   ;;  %v638_v21 = vmov (%p113_p0), 920167782   ;;  %v639_v28 = vmov (%p113_p0), 1326507024  }
  0x81   : > { %v136_v2 = vand.u32 (%p113_p0), 2139095040, %v775_v1  ;;  %v133_v4 = vand.u32 (%p113_p0), 2147483647, %v775_v1  ;;  %vm135_vm7 = vcmp.lt.s32.totalorder (%p113_p0), %v775_v1, 0  ;;  %vm225_vm15 = vweird.f32 (%p113_p0), %v775_v1 }
  0x83   : > { %v137_v3 = vshrl.u32 (%p113_p0), %v136_v2, 23  ;;  %v140_v7 = vand.u32 (%p113_p0), 8388607, %v133_v4  ;;  %vm134_vm8 = vcmp.le.f32.partialorder (%p113_p0), %v133_v4, 0.7853982 }
  0x85   : > { %v458_v5 = vadd.s32 (%p113_p0), 4294967169, %v137_v3  ;;  %v141_v10 = vor.u32 (%p113_p0), 8388608, %v140_v7 }
  0x87   : > { %v143_v6 = vadd.s32 1, %v458_v5  ;;  %v181_v30 = vshll.u32 %v141_v10, 8 }
  0x89   : > { %vm144_vm0 = vcmp.gt.s32.totalorder %v143_v6, 0 }
  0x8a   : > { %v145_v8 = vsel %vm144_vm0, %v143_v6, 0 }
  0x8b   : > { %v147_v9 = vand.u32 31, %v145_v8  ;;  %v146_v11 = vshrl.u32 %v145_v8, 5 }
  0x8d   : > { %v148_v12 = vsub.s32 32, %v147_v9  ;;  %v150_v14 = vshll.u32 %v634_v13, %v147_v9  ;;  %v153_v16 = vshll.u32 %v635_v15, %v147_v9  ;;  %v156_v18 = vshll.u32 %v636_v17, %v147_v9 }
  0x8e   : > { %v159_v20 = vshll.u32 %v637_v19, %v147_v9  ;;  %v162_v22 = vshll.u32 %v638_v21, %v147_v9  ;;  %vm165_vm1 = vcmp.lt.s32.totalorder %v146_v11, 1  ;;  %vm168_vm2 = vcmp.lt.s32.totalorder %v146_v11, 4 }
  0x8f   : > { %v149_v23 = vshrl.u32 %v634_v13, %v148_v12  ;;  %v151_v24 = vshrl.u32 %v635_v15, %v148_v12  ;;  %v154_v25 = vshrl.u32 %v636_v17, %v148_v12  ;;  %v157_v26 = vshrl.u32 %v637_v19, %v148_v12 }
  0x90   : > { %v160_v27 = vshrl.u32 %v638_v21, %v148_v12  ;;  %v163_v29 = vshrl.u32 %v639_v28, %v148_v12  ;;  %vm166_vm3 = vcmp.lt.s32.totalorder %v146_v11, 2  ;;  %vm167_vm4 = vcmp.lt.s32.totalorder %v146_v11, 3 }
  0x91   : > { %v152_v31 = vor.u32 %v151_v24, %v150_v14  ;;  %v155_v32 = vor.u32 %v154_v25, %v153_v16  ;;  %v158_v33 = vor.u32 %v157_v26, %v156_v18 }
  0x92   : > { %v161_v34 = vor.u32 %v160_v27, %v159_v20  ;;  %v164_v35 = vor.u32 %v163_v29, %v162_v22  ;;  %v129_v29 = vld [vmem:[#allocation3] sm:$0xff] }
  0x93   : > { %v169_v36 = vsel %vm165_vm1, %v149_v23, %v152_v31  ;;  %v170_v37 = vsel %vm168_vm2, %v158_v33, 2102212464  ;;  %v173_v38 = vsel %vm165_vm1, %v152_v31, %v155_v32  ;;  %v177_v39 = vsel %vm165_vm1, %v155_v32, %v158_v33 }
  0x94   : > { %v171_v40 = vsel %vm167_vm4, %v155_v32, %v170_v37  ;;  %v174_v41 = vsel %vm168_vm2, %v161_v34, 920167782  ;;  %v178_v42 = vsel %vm168_vm2, %v164_v35, 1326507024  ;;  %vm361_vm2 = vcmask 7168  }
  0x95   : > { %v175_v43 = vsel %vm167_vm4, %v158_v33, %v174_v41  ;;  %v179_v44 = vsel %vm167_vm4, %v161_v34, %v178_v42  ;;  %v172_v45 = vsel %vm166_vm3, %v169_v36, %v171_v40  ;;  %v127_v41 = vld [vmem:[#allocation2] sm:$0xff]  ;;  %v128_v42 = vld [vmem:[#allocation2 + $0x8] sm:$0xff] }
  0x96   : > { %v176_v46 = vsel %vm166_vm3, %v173_v38, %v175_v43  ;;  %v180_v47 = vsel %vm166_vm3, %v177_v39, %v179_v44  ;;  %v188_v52 = vmul.u32 %v181_v30, %v172_v45 }
  0x97   : > { %v781_v48 = vmul.u32.u64.low %v181_v30, %v180_v47  ;;  %v782_v49 = vmul.u32.u64.high %v181_v30, %v180_v47, %v781_v48  ;;  %v784_v50 = vmul.u32.u64.low %v181_v30, %v176_v46  ;;  %v785_v51 = vmul.u32.u64.high %v181_v30, %v176_v46, %v784_v50  ;;  %v130_v30 = vld [vmem:[#allocation3 + $0x8] sm:$0xff] }
  0x99   : > { %vm190_vm5 = vc.u32 %v782_v49, %v784_v50  ;;  %v191_v53 = vadd.s32 1, %v785_v51  ;;  %v189_v0 = vadd.s32 %v784_v50, %v782_v49 }
  0x9b   : > { %v192_v54 = vsel %vm190_vm5, %v191_v53, %v785_v51 }
  0x9c   : > { %v193_v55 = vadd.s32 %v192_v54, %v188_v52 }
  0x9e   : > { %v194_v56 = vadd.s32 536870912, %v193_v55 }
  0xa0   : > { %v195_v57 = vshrl.u32 %v194_v56, 30 }
  0xa2   : > { %v196_v58 = vshll.u32 %v195_v57, 30  ;;  %v219_v14 = vsub.s32 4, %v195_v57 }
  0xa4   : > { %v197_v59 = vsub.s32 %v193_v55, %v196_v58  ;;  %v220_v17 = vsel %vm135_vm7, %v219_v14, %v195_v57 }
  0xa5   : > { %v222_v20 = vsel %vm134_vm8, 0, %v220_v17 }
  0xa6   : > { %v199_v60 = vsub.s32 0, %v197_v59  ;;  %v329_v21 = vadd.s32 3, %v222_v20  ;;  %v226_v22 = vand.u32 3, %v222_v20 }
  0xa8   : > { %v459_v61 = vmin.u32 %v199_v60, %v197_v59  ;;  %v330_v23 = vand.u32 3, %v329_v21  ;;  %vm231_vm9 = vcmp.eq.s32.totalorder %v226_v22, 2  ;;  %vm228_vm11 = vcmp.eq.s32.totalorder %v226_v22, 0 }
  0xa9   : > { %vm227_vm13 = vcmp.lt.s32.totalorder %v226_v22, 2 }
  0xaa   : > { %v201_v62 = vclz %v459_v61  ;;  %vm335_vm10 = vcmp.eq.s32.totalorder %v330_v23, 2  ;;  %vm332_vm12 = vcmp.eq.s32.totalorder %v330_v23, 0  ;;  %vm331_vm14 = vcmp.lt.s32.totalorder %v330_v23, 2 }
  0xac   : > { %v460_v63 = vadd.s32 4294967294, %v201_v62 }
  0xae   : > { %vm461_vm6 = vcmp.lt.s32.totalorder %v460_v63, 0 }
  0xaf   : > { %v204_v2 = vsel %vm461_vm6, 0, %v460_v63 }
  0xb0   : > { %v205_v3 = vsub.s32 32, %v204_v2  ;;  %v206_v5 = vshll.u32 %v197_v59, %v204_v2  ;;  %v209_v6 = vsub.s32 4294967266, %v204_v2 }
  0xb2   : > { %v207_v7 = vshrl.u32 %v189_v0, %v205_v3  ;;  %v210_v8 = vadd.s32 127, %v209_v6 }
  0xb4   : > { %v208_v9 = vor.u32 %v207_v7, %v206_v5  ;;  %v211_v10 = vshll.u32 %v210_v8, 23 }
  0xb6   : > { %v212_v11 = vor.u32 4788187, %v211_v10  ;;  %v215_v12 = vcvt.s32.f32 %v208_v9 }
  0xb8   : > { %v213_v13 = vand.u32 2147483647, %v212_v11 }
  0xba   : > { %v216_v15 = vmul.f32 %v215_v12, %v213_v13 }
  0xbc   : > { %v217_v16 = vxor.u32 2147483648, %v216_v15 }
  0xbe   : > { %v218_v18 = vsel %vm135_vm7, %v217_v16, %v216_v15 }
  0xbf   : > { %v221_v19 = vsel %vm134_vm8, %v775_v1, %v218_v18 }
  0xc0   : > { %508 = vcosq.f32 %v221_v19 }
  0xc1   : > { %510 = vsinq.f32 %v221_v19 }
  0xca   : > { %v509_v24 = vpop.eup %508 }
  0xcb   : > { %v511_v25 = vpop.eup %510  ;;  %v232_v26 = vxor.u32 2147483648, %v509_v24 }
  0xcc   : > { %v229_v4 = vxor.u32 2147483648, %v511_v25 }
  0xcd   : > { %v233_v27 = vsel %vm231_vm9, %v232_v26, %v511_v25  ;;  %v337_v28 = vsel %vm335_vm10, %v232_v26, %v511_v25 }
  0xce   : > { %v230_v31 = vsel %vm228_vm11, %v509_v24, %v229_v4  ;;  %v334_v32 = vsel %vm332_vm12, %v509_v24, %v229_v4 }
  0xcf   : > { %v234_v33 = vsel %vm227_vm13, %v230_v31, %v233_v27  ;;  %v338_v34 = vsel %vm331_vm14, %v334_v32, %v337_v28 }
  0xd0   : > { %v235_v35 = vsel %vm225_vm15, nan, %v234_v33  ;;  %v339_v36 = vsel %vm225_vm15, nan, %v338_v34 }
  0xd1   : > { %v340_v37 = vmul.f32 %v235_v35, %v129_v29  ;;  %v341_v38 = vmul.f32 %v339_v36, %v130_v30  ;;  %v344_v39 = vmul.f32 %v235_v35, %v130_v30  ;;  %v345_v40 = vmul.f32 %v339_v36, %v129_v29 }
  0xd3   : > { %v342_v43 = vadd.f32 %v341_v38, %v340_v37  ;;  %v346_v44 = vsub.f32 %v344_v39, %v345_v40 }
  0xd5   : > { %v343_v45 = vsub.f32 %v342_v43, %v127_v41  ;;  %v347_v1 = vsub.f32 %v346_v44, %v128_v42 }
  0xd7   : > { %v348_v46 = vmul.f32 %v343_v45, %v343_v45  ;;  %v349_v47 = vmul.f32 %v347_v1, %v347_v1 }
  0xd9   : > { %v350_v48 = vadd.f32 %v349_v47, %v348_v46 }
  0xdb   : > { %512 = vrsqrt.f32 %v350_v48  ;;  %vm353_vm0 = vcmp.eq.f32.partialorder %v350_v48, inf  ;;  %v356_v50 = vand.u32 2147483648, %v350_v48  ;;  %vm355_vm1 = vcmp.eq.f32.partialorder %v350_v48, 0.0 }
  0xe5   : > { %v513_v49 = vpop.eup %512 }
  0xe6   : > { %v352_v51 = vmul.f32 %v513_v49, %v350_v48 }
  0xe8   : > { %v354_v52 = vsel %vm353_vm0, %v350_v48, %v352_v51 }
  0xe9   : > { %v357_v53 = vsel %vm355_vm1, %v356_v50, %v354_v52 }
  0xea   : > { %358 = vadd.xlane.f32.xlu0 %v357_v53 }
 0x177   : > { %v359_v54 = vpop.xlane.xlu0 %358 }
 0x178   : > { %v360_v55 = vsub.f32 6.0, %v359_v54 }
 0x17a   : > { %362 = vst.msk [vmem:[%s684_s27] sm:$0xff] %vm361_vm2, %v360_v55 }
 0x17b PF: > { %s17_s22 = sadd.s32 1, %s618_s22  }
 0x17c   : > { %p14_p1 = scmp.ge.s32.totalorder %s17_s22, 3  }
 0x17e   :  { %16 = sbr.rel (!%p14_p1) target bundleno = 13 (0xd), region = 91 }
 0x185   :  { %382 = vsyncmov [#allocation5] }
 0x188   :  { %s383_s23 = vpop.sfrf %382 }
 0x189   :  { %p468_p2 = scmp.ne.s32.totalorder %s383_s23, 0 }
 0x18b   :  { %387 = shalt.err (%p468_p2)  }
 0x18c   :  { %389 = vsyncmov [#allocation5 + $0x1] }
 0x18f   :  { %s390_s28 = vpop.sfrf %389 }
 0x190   :  { %p469_p3 = scmp.ne.s32.totalorder %s390_s28, 0 }
 0x192   :  { %394 = shalt.err (%p469_p3)  }
 0x193   :  { %396 = vsyncmov [#allocation5 + $0x2] }
 0x196   :  { %s397_s24 = vpop.sfrf %396 }
 0x197   :  { %p470_p4 = scmp.ne.s32.totalorder %s397_s24, 0 }
 0x199   :  { %401 = shalt.err (%p470_p4)  }

</bundles_post_ra>
